<compile_context>
chip_gen: v6e
topology: v6e:2x2x1
jax: 0.10.0
libtpu: 0.0.40
codegen_flags: <defaults>
</compile_context>

<pallas_src>
import jax
import jax.numpy as jnp
from jax.experimental import pallas as pl
from jax.experimental.pallas import tpu as pltpu


def siamese_kernel(xcat_ref,
                   w1_ref, b1_ref,
                   w2_ref, b2_ref,
                   w21_ref, b21_ref,
                   w22_ref, b22_ref,
                   out_ref):
    """All refs are full arrays resident in VMEM.

    xcat_ref : (2B, 784) bf16   -- [x1; x2] flattened and concatenated
    w1_ref   : (784, 128) bf16,  b1_ref : (1, 128) f32   -- fc1
    w2_ref   : (128, 128) bf16,  b2_ref : (1, 128) f32   -- fc2
    w21_ref  : (1, 128)   f32,   b21_ref: (1, 128) f32   -- fc2_1 (in=1)
    w22_ref  : (1, 128)   f32,   b22_ref: (1, 1)   f32   -- fc2_2 (stored as row)
    out_ref  : (B, 1) f32
    """
    B = out_ref.shape[0]

    # ---- fused shared-weight towers: one matmul per layer over 2B rows ----
    h = jnp.dot(xcat_ref[...], w1_ref[...],
                preferred_element_type=jnp.float32) + b1_ref[...]
    h = jnp.maximum(h, 0.0)                                   # ReLU (f32, VPU)
    h = jnp.dot(h.astype(jnp.bfloat16), w2_ref[...],
                preferred_element_type=jnp.float32) + b2_ref[...]
    h = jnp.maximum(h, 0.0)                                   # ReLU -> (2B, 128)

    out1 = h[:B, :]                                           # tower 1
    out2 = h[B:, :]                                           # tower 2

    # euclidean_distance: sqrt(max(sum((o1-o2)^2, dim=1, keepdim), 0.001))
    diff = out1 - out2
    sum_square = jnp.sum(diff * diff, axis=1, keepdims=True)  # (B, 1)
    distance = jnp.sqrt(jnp.maximum(sum_square, jnp.float32(0.001)))

    # fc2_1: Linear(1, 128) on a (B, 1) input -> rank-1 broadcast multiply.
    dense = distance * w21_ref[...] + b21_ref[...]            # (B, 128)
    dense = jnp.maximum(dense, 0.0)                           # ReLU

    # fc2_2: Linear(128, 1) as VPU multiply + lane reduction (no N=1 MXU push).
    logits = jnp.sum(dense * w22_ref[...], axis=1, keepdims=True) + b22_ref[...]
    out_ref[...] = jax.nn.sigmoid(logits)


def siamese_forward(x1_nchw, x2_nchw, params):
    """x1_nchw, x2_nchw: (B, 1, 28, 28) float32. Returns (B, 1) float32."""
    B = x1_nchw.shape[0]
    x1 = x1_nchw.reshape(B, 28 * 28)
    x2 = x2_nchw.reshape(B, 28 * 28)
    xcat = jnp.concatenate([x1, x2], axis=0).astype(jnp.bfloat16)   # (2B, 784)

    operands = (
        xcat,
        params["w1"].astype(jnp.bfloat16), params["b1"],
        params["w2"].astype(jnp.bfloat16), params["b2"],
        params["w21"], params["b21"],
        params["w22"], params["b22"],
    )

    vmem_spec = pl.BlockSpec(memory_space=pltpu.MemorySpace.VMEM)

    return pl.pallas_call(
        siamese_kernel,
        out_shape=jax.ShapeDtypeStruct((B, 1), jnp.float32),
        in_specs=[vmem_spec] * len(operands),
        out_specs=vmem_spec,
    )(*operands)


def init_params(key):
    """Deterministic synthetic weights with PyTorch Linear-like init,
    stored pre-transposed as (in, out); fc2_2 weight stored as a (1, 128) row."""
    ks = jax.random.split(key, 8)

    def lin(k_w, k_b, fan_in, fan_out):
        bound = 1.0 / jnp.sqrt(jnp.float32(fan_in))
        w = jax.random.uniform(k_w, (fan_in, fan_out), jnp.float32, -bound, bound)
        b = jax.random.uniform(k_b, (1, fan_out), jnp.float32, -bound, bound)
        return w, b

    w1, b1 = lin(ks[0], ks[1], 28 * 28, 128)   # fc1
    w2, b2 = lin(ks[2], ks[3], 128, 128)       # fc2
    w21, b21 = lin(ks[4], ks[5], 1, 128)       # fc2_1
    w22_col, b22 = lin(ks[6], ks[7], 128, 1)   # fc2_2
    w22 = w22_col.reshape(1, 128)              # store as lane-dense row
    return dict(w1=w1, b1=b1, w2=w2, b2=b2,
                w21=w21, b21=b21, w22=w22, b22=b22)


def reference_forward(x1_nchw, x2_nchw, p):
    """Pure-JAX reference mirroring the PyTorch module, with the same
    bf16-weight / bf16-activation, f32-accumulation matmul semantics as the
    kernel so the comparison is tight."""
    B = x1_nchw.shape[0]
    relu = lambda t: jnp.maximum(t, 0.0)
    bf = jnp.bfloat16

    def once(x):
        x = x.reshape(B, 28 * 28).astype(bf)
        h = jnp.dot(x, p["w1"].astype(bf),
                    preferred_element_type=jnp.float32) + p["b1"]
        h = relu(h)
        h = jnp.dot(h.astype(bf), p["w2"].astype(bf),
                    preferred_element_type=jnp.float32) + p["b2"]
        return relu(h)

    o1, o2 = once(x1_nchw), once(x2_nchw)
    ss = jnp.sum(jnp.square(o1 - o2), axis=1, keepdims=True)
    dist = jnp.sqrt(jnp.maximum(ss, 0.001))
    dense = relu(dist @ p["w21"] + p["b21"])
    logits = jnp.sum(dense * p["w22"], axis=1, keepdims=True) + p["b22"]
    return jax.nn.sigmoid(logits)


if __name__ == "__main__":
    key = jax.random.PRNGKey(0)
    k_p, k_x1, k_x2 = jax.random.split(key, 3)

    params = init_params(k_p)

    B = 8
    x1 = jax.random.normal(k_x1, (B, 1, 28, 28), jnp.float32)
    x2 = jax.random.normal(k_x2, (B, 1, 28, 28), jnp.float32)

    out = siamese_forward(x1, x2, params)
    out = jax.block_until_ready(out)

    ref = reference_forward(x1, x2, params)
    assert out.shape == (B, 1)
    assert jnp.allclose(out, ref, atol=1e-3, rtol=1e-3), (out, ref)

    print("KERNEL_OK")
</pallas_src>

<mosaic_0001>
module attributes {stable_mosaic.version = 11 : i64} {
  func.func @siamese_kernel(%arg0: memref<16x784xbf16, #tpu.memory_space<vmem>>, %arg1: memref<784x128xbf16, #tpu.memory_space<vmem>>, %arg2: memref<1x128xf32, #tpu.memory_space<vmem>>, %arg3: memref<128x128xbf16, #tpu.memory_space<vmem>>, %arg4: memref<1x128xf32, #tpu.memory_space<vmem>>, %arg5: memref<1x128xf32, #tpu.memory_space<vmem>>, %arg6: memref<1x128xf32, #tpu.memory_space<vmem>>, %arg7: memref<1x128xf32, #tpu.memory_space<vmem>>, %arg8: memref<1x1xf32, #tpu.memory_space<vmem>>, %arg9: memref<8x1xf32, #tpu.memory_space<vmem>>) attributes {dimension_semantics = [], scalar_prefetch = 0 : i64, scratch_operands = 0 : i64, tpu.core_type = #tpu.core_type<tc>} {
    %c0 = arith.constant 0 : index
    %c0_0 = arith.constant 0 : index
    %0 = vector.load %arg0[%c0, %c0_0] : memref<16x784xbf16, #tpu.memory_space<vmem>>, vector<16x784xbf16>
    %c0_1 = arith.constant 0 : index
    %c0_2 = arith.constant 0 : index
    %1 = vector.load %arg1[%c0_1, %c0_2] : memref<784x128xbf16, #tpu.memory_space<vmem>>, vector<784x128xbf16>
    %cst = arith.constant dense<0.000000e+00> : vector<16x128xf32>
    %2 = tpu.matmul %0, %1, %cst {dimension_numbers = #tpu.dot_dimension_numbers<[1], [0], [0], [1], [0, 0, 1, 1], [], []>} : vector<16x784xbf16>, vector<784x128xbf16>, vector<16x128xf32> -> vector<16x128xf32>
    %c0_3 = arith.constant 0 : index
    %c0_4 = arith.constant 0 : index
    %3 = vector.load %arg2[%c0_3, %c0_4] : memref<1x128xf32, #tpu.memory_space<vmem>>, vector<1x128xf32>
    %4 = vector.broadcast %3 : vector<1x128xf32> to vector<16x128xf32>
    %5 = arith.addf %2, %4 : vector<16x128xf32>
    %cst_5 = arith.constant 0.000000e+00 : f32
    %6 = vector.broadcast %cst_5 : f32 to vector<16x128xf32>
    %7 = arith.maximumf %5, %6 : vector<16x128xf32>
    %8 = arith.truncf %7 : vector<16x128xf32> to vector<16x128xbf16>
    %c0_6 = arith.constant 0 : index
    %c0_7 = arith.constant 0 : index
    %9 = vector.load %arg3[%c0_6, %c0_7] : memref<128x128xbf16, #tpu.memory_space<vmem>>, vector<128x128xbf16>
    %cst_8 = arith.constant dense<0.000000e+00> : vector<16x128xf32>
    %10 = tpu.matmul %8, %9, %cst_8 {dimension_numbers = #tpu.dot_dimension_numbers<[1], [0], [0], [1], [0, 0, 1, 1], [], []>} : vector<16x128xbf16>, vector<128x128xbf16>, vector<16x128xf32> -> vector<16x128xf32>
    %c0_9 = arith.constant 0 : index
    %c0_10 = arith.constant 0 : index
    %11 = vector.load %arg4[%c0_9, %c0_10] : memref<1x128xf32, #tpu.memory_space<vmem>>, vector<1x128xf32>
    %12 = vector.broadcast %11 : vector<1x128xf32> to vector<16x128xf32>
    %13 = arith.addf %10, %12 : vector<16x128xf32>
    %cst_11 = arith.constant 0.000000e+00 : f32
    %14 = vector.broadcast %cst_11 : f32 to vector<16x128xf32>
    %15 = arith.maximumf %13, %14 : vector<16x128xf32>
    %16 = vector.extract_strided_slice %15 {offsets = [0, 0], sizes = [8, 128], strides = [1, 1]} : vector<16x128xf32> to vector<8x128xf32>
    %17 = vector.extract_strided_slice %15 {offsets = [8, 0], sizes = [8, 128], strides = [1, 1]} : vector<16x128xf32> to vector<8x128xf32>
    %18 = arith.subf %16, %17 : vector<8x128xf32>
    %19 = arith.mulf %18, %18 : vector<8x128xf32>
    %cst_12 = arith.constant dense<0.000000e+00> : vector<8xf32>
    %20 = vector.multi_reduction <add>, %19, %cst_12 [1] : vector<8x128xf32> to vector<8xf32>
    %21 = vector.shape_cast %20 : vector<8xf32> to vector<8x1xf32>
    %cst_13 = arith.constant 1.000000e-03 : f32
    %22 = vector.broadcast %cst_13 : f32 to vector<8x1xf32>
    %23 = arith.maximumf %21, %22 : vector<8x1xf32>
    %24 = math.sqrt %23 : vector<8x1xf32>
    %c0_14 = arith.constant 0 : index
    %c0_15 = arith.constant 0 : index
    %25 = vector.load %arg5[%c0_14, %c0_15] : memref<1x128xf32, #tpu.memory_space<vmem>>, vector<1x128xf32>
    %26 = vector.broadcast %24 : vector<8x1xf32> to vector<8x128xf32>
    %27 = vector.broadcast %25 : vector<1x128xf32> to vector<8x128xf32>
    %28 = arith.mulf %26, %27 : vector<8x128xf32>
    %c0_16 = arith.constant 0 : index
    %c0_17 = arith.constant 0 : index
    %29 = vector.load %arg6[%c0_16, %c0_17] : memref<1x128xf32, #tpu.memory_space<vmem>>, vector<1x128xf32>
    %30 = vector.broadcast %29 : vector<1x128xf32> to vector<8x128xf32>
    %31 = arith.addf %28, %30 : vector<8x128xf32>
    %cst_18 = arith.constant 0.000000e+00 : f32
    %32 = vector.broadcast %cst_18 : f32 to vector<8x128xf32>
    %33 = arith.maximumf %31, %32 : vector<8x128xf32>
    %c0_19 = arith.constant 0 : index
    %c0_20 = arith.constant 0 : index
    %34 = vector.load %arg7[%c0_19, %c0_20] : memref<1x128xf32, #tpu.memory_space<vmem>>, vector<1x128xf32>
    %35 = vector.broadcast %34 : vector<1x128xf32> to vector<8x128xf32>
    %36 = arith.mulf %33, %35 : vector<8x128xf32>
    %cst_21 = arith.constant dense<0.000000e+00> : vector<8xf32>
    %37 = vector.multi_reduction <add>, %36, %cst_21 [1] : vector<8x128xf32> to vector<8xf32>
    %38 = vector.shape_cast %37 : vector<8xf32> to vector<8x1xf32>
    %c0_22 = arith.constant 0 : index
    %c0_23 = arith.constant 0 : index
    %39 = vector.load %arg8[%c0_22, %c0_23] : memref<1x1xf32, #tpu.memory_space<vmem>>, vector<1x1xf32>
    %40 = vector.broadcast %39 : vector<1x1xf32> to vector<8x1xf32>
    %41 = arith.addf %38, %40 : vector<8x1xf32>
    %42 = arith.negf %41 : vector<8x1xf32>
    %43 = math.exp %42 : vector<8x1xf32>
    %cst_24 = arith.constant 1.000000e+00 : f32
    %44 = vector.broadcast %cst_24 : f32 to vector<8x1xf32>
    %45 = arith.addf %44, %43 : vector<8x1xf32>
    %46 = arith.divf %44, %45 : vector<8x1xf32>
    %c0_25 = arith.constant 0 : index
    %c0_26 = arith.constant 0 : index
    %47 = vector.load %arg9[%c0_25, %c0_26] : memref<8x1xf32, #tpu.memory_space<vmem>>, vector<8x1xf32>
    tpu.vector_store %arg9[%c0_25, %c0_26], %46 {strides = array<i32>} : memref<8x1xf32, #tpu.memory_space<vmem>>, vector<8x1xf32>,
    return
  }
}

</mosaic_0001>

<bundles_post_ra>
// kernel: tpu_custom_call.1
= control target key start
LH: loop header
LB: loop body
LE: loop exit
PB: predicated region body
PF: predicated region fallthrough
CT: control target
= control target key end

     0   :  { %s1287_s0 = inlined_call_operand.hbm [shape: bf16[16,784], index: 0, kind: input, shape index: {}]   ;;  %s1288_s1 = inlined_call_operand.hbm [shape: bf16[784,128], index: 1, kind: input, shape index: {}]   ;;  %s1289_s2 = inlined_call_operand.vmem [shape: f32[1,128], index: 2, kind: input, shape index: {}]   ;;  %s1290_s3 = inlined_call_operand.hbm [shape: bf16[128,128], index: 3, kind: input, shape index: {}]   ;;  %s1291_s4 = inlined_call_operand.vmem [shape: f32[1,128], index: 4, kind: input, shape index: {}]   ;;  %s1292_s5 = inlined_call_operand.vmem [shape: f32[1,128], index: 5, kind: input, shape index: {}]   ;;  %s1293_s6 = inlined_call_operand.vmem [shape: f32[1,128], index: 6, kind: input, shape index: {}]   ;;  %s1294_s7 = inlined_call_operand.vmem [shape: f32[1,128], index: 7, kind: input, shape index: {}]   ;;  %s1295_s8 = inlined_call_operand.<no memory space> [shape: f32[1,1], index: 8, kind: input, shape index: {}]   ;;  %s1296_s9 = inlined_call_operand.vmem [shape: f32[8,1], index: 9, kind: output, shape index: {}]  }
   0x1   :  { %v14_v0 = vstv %s1295_s8 }
   0x2   :  { %15 = vst [vmem:[#allocation2] sm:$0x1] %v14_v0 }
   0x3   :  { %16 = vsyncpa [#allocation4], 0 }
   0x4   :  { %17 = vsyncpa [#allocation6], 0  ;;  %s1185_s11 = smov [#allocation5]  }
   0x5   :  { %s35_s12 = sshll.u32 %s1185_s11, 4  ;;  %s36_s12 = int_to_ptr.vmem [resolvable:$true] %s35_s12 }
   0x6   :  { %s1129_s13 = scalar_lea.vmem %s36_s12, 6272  ;;  %p1134_p1 = scmp.lt.s32.totalorder %s36_s12, %s36_s12 }
   0x7   :  { %p1130_p0 = scmp.ne.s32.totalorder %s36_s12, %s1129_s13  ;;  %p1135_p2 = scmp.lt.s32.totalorder %s1129_s13, %s1129_s13 }
   0x9   :  { %p1136_p3 = por %p1135_p2, %p1134_p1 }
   0xb   :  { %p1137_p4 = pnand %p1136_p3, %p1130_p0 }
   0xd   :  { %1140 = shalt.err (!%p1137_p4)
}
   0xe   :  { %s1186_s14 = smov 64   ;;  %s1187_s15 = smov 4  }
   0xf   :  { %41 = dma.hbm_to_vmem [thread:$0]  %s1288_s1, 6272, %s36_s12, [#allocation6], %s1186_s14, %s1186_s14, %s1187_s15  }
  0x10   :  { %s1188_s8 = smov [#allocation3]  }
  0x11   :  { %s23_s18 = sshll.u32 %s1188_s8, 4  ;;  %s24_s18 = int_to_ptr.vmem [resolvable:$true] %s23_s18 }
  0x12   :  { %s1149_s19 = scalar_lea.vmem %s24_s18, 896  ;;  %p1154_p6 = scmp.lt.s32.totalorder %s24_s18, %s24_s18 }
  0x13   :  { %p1150_p5 = scmp.ne.s32.totalorder %s24_s18, %s1149_s19  ;;  %p1155_p7 = scmp.lt.s32.totalorder %s1149_s19, %s1149_s19 }
  0x15   :  { %p1156_p8 = por %p1155_p7, %p1154_p6 }
  0x17   :  { %p1157_p9 = pnand %p1156_p8, %p1150_p5 }
  0x19   :  { %1160 = shalt.err (!%p1157_p9)
}
  0x1a   :  { %s1189_s20 = smov 448   ;;  %s1190_s21 = smov 28  }
  0x1b   :  { %29 = dma.hbm_to_vmem [thread:$0]  %s1287_s0, 896, %s24_s18, [#allocation4], %s1189_s20, %s1189_s20, %s1190_s21  }
  0x1c   :  { %s1191_s24 = smov [#allocation7]  }
  0x1d   :  { %s49_s25 = sshll.u32 %s1191_s24, 4  ;;  %s50_s25 = int_to_ptr.vmem [resolvable:$true] %s49_s25 }
  0x1e   :  { %s1169_s1 = scalar_lea.vmem %s50_s25, 1024  ;;  %p1174_p11 = scmp.lt.s32.totalorder %s50_s25, %s50_s25 }
  0x1f   :  { %p1170_p10 = scmp.ne.s32.totalorder %s50_s25, %s1169_s1  ;;  %p1175_p12 = scmp.lt.s32.totalorder %s1169_s1, %s1169_s1 }
  0x21   :  { %p1176_p13 = por %p1175_p12, %p1174_p11 }
  0x23   :  { %p1177_p0 = pnand %p1176_p13, %p1170_p10 }
  0x25   :  { %1180 = shalt.err (!%p1177_p0)
}
  0x26   :  { %55 = dma.hbm_to_vmem [thread:$0]  %s1290_s3, 1024, %s50_s25, [#allocation6], %s1186_s14, %s1186_s14, %s1187_s15  }
  0x27   :  { %1181 = dma.done.wait [#allocation4], 896  }
  0x28   :  { %1182 = vsyncadd [#allocation4], 4294966400 }
  0x29   :  { %1183 = dma.done.wait [#allocation6], 7296  }
  0x2a   :  { %1184 = vsyncadd [#allocation6], 4294960000  ;;  %v1048_v1 = vld [vmem:[#allocation5 + $0x78] sm:$0xff]   ;;  %v1052_v5 = vld [vmem:[#allocation5 + $0x70] sm:$0xff]   ;;  %v1192_v39 = vmov 0.0   ;;  %vm1193_vm0 = vmmov 0  }
  0x2b   :  { %v1049_v2 = vld [vmem:[#allocation5 + $0x38] sm:$0xff]   ;;  %936 = vmatprep.subr.bf16.mxu0 %v1048_v1  ;;  %v1053_v6 = vld [vmem:[#allocation5 + $0x30] sm:$0xff]   ;;  %v1056_v9 = vld [vmem:[#allocation5 + $0x68] sm:$0xff]   ;;  %vm518_vm1 = vcmask 130048   ;;  %vm856_vm4 = vcmask 7168  }
  0x2c   :  { %v1050_v3 = vld [vmem:[#allocation5 + $0xf8] sm:$0xff]   ;;  %937 = vmatpush3.bf16.msra.mxu0 %v1049_v2  ;;  %v1054_v7 = vld [vmem:[#allocation5 + $0xf0] sm:$0xff]   ;;  %v1057_v10 = vld [vmem:[#allocation5 + $0x28] sm:$0xff]  }
  0x2d   :  { %v1051_v4 = vld [vmem:[#allocation5 + $0xb8] sm:$0xff]   ;;  %958 = vmatprep.subr.bf16.mxu1 %v1050_v3  ;;  %938 = vmatprep.subr.bf16.mxu0 %v1052_v5  ;;  %v1055_v8 = vld [vmem:[#allocation5 + $0xb0] sm:$0xff]   ;;  %v1058_v11 = vld [vmem:[#allocation5 + $0xe8] sm:$0xff]  }
  0x2e   :  { %959 = vmatpush3.bf16.msra.mxu1 %v1051_v4  ;;  %v1059_v12 = vld [vmem:[#allocation5 + $0xa8] sm:$0xff]   ;;  %v1060_v13 = vld [vmem:[#allocation5 + $0x60] sm:$0xff]   ;;  %v1064_v17 = vld [vmem:[#allocation5 + $0x58] sm:$0xff]  }
  0x2f   :  { %960 = vmatprep.subr.bf16.mxu1 %v1054_v7  ;;  %v1061_v14 = vld [vmem:[#allocation5 + $0x20] sm:$0xff]   ;;  %v1065_v18 = vld [vmem:[#allocation5 + $0x18] sm:$0xff]   ;;  %v1068_v21 = vld [vmem:[#allocation5 + $0x50] sm:$0xff]  }
  0x30   :  { %939 = vmatpush3.bf16.msra.mxu0 %v1053_v6  ;;  %v1062_v15 = vld [vmem:[#allocation5 + $0xe0] sm:$0xff]   ;;  %v1066_v19 = vld [vmem:[#allocation5 + $0xd8] sm:$0xff]   ;;  %v1069_v22 = vld [vmem:[#allocation5 + $0x10] sm:$0xff]  }
  0x31   :  { %940 = vmatprep.subr.bf16.mxu0 %v1056_v9  ;;  %v1063_v16 = vld [vmem:[#allocation5 + $0xa0] sm:$0xff]   ;;  %v1067_v20 = vld [vmem:[#allocation5 + $0x98] sm:$0xff]   ;;  %v1070_v23 = vld [vmem:[#allocation5 + $0xd0] sm:$0xff]  }
  0x32   :  { %961 = vmatpush3.bf16.msra.mxu1 %v1055_v8  ;;  %v1071_v24 = vld [vmem:[#allocation5 + $0x90] sm:$0xff]   ;;  %v1072_v25 = vld [vmem:[#allocation5 + $0x48] sm:$0xff]   ;;  %v1076_v29 = vld [vmem:[#allocation5 + $0x40] sm:$0xff]  }
  0x33   :  { %962 = vmatprep.subr.bf16.mxu1 %v1058_v11  ;;  %v1073_v26 = vld [vmem:[#allocation5 + $0x8] sm:$0xff]   ;;  %v1077_v30 = vld [vmem:[#allocation5] sm:$0xff]   ;;  %v1083_v35 = vld [vmem:[#allocation5 + $0x178] sm:$0xff]  }
  0x34   :  { %941 = vmatpush3.bf16.msra.mxu0 %v1057_v10  ;;  %v1074_v27 = vld [vmem:[#allocation5 + $0xc8] sm:$0xff]   ;;  %v1078_v31 = vld [vmem:[#allocation5 + $0xc0] sm:$0xff]   ;;  %v1086_v37 = vld [vmem:[#allocation3 + $0xc] ss:$28 sps:$4 sm:$0xff]  }
  0x35   :  { %942 = vmatprep.subr.bf16.mxu0 %v1060_v13  ;;  %v1075_v28 = vld [vmem:[#allocation5 + $0x88] sm:$0xff]   ;;  %v1082_v34 = vld [vmem:[#allocation5 + $0x80] sm:$0xff]   ;;  %v1087_v38 = vld [vmem:[#allocation5 + $0x138] sm:$0xff]   ;;  %595 = vmatprep.mubr.bf16.mxu1 %v1086_v37 }
  0x36   :  { %963 = vmatpush3.bf16.msra.mxu1 %v1059_v12  ;;  %v1079_v32 = vld [vmem:[#allocation3] ss:$28 sps:$4 sm:$0xff]   ;;  %v1084_v36 = vld [vmem:[#allocation3 + $0x8] ss:$28 sps:$4 sm:$0xff]   ;;  %v1094_v46 = vld [vmem:[#allocation5 + $0x158] sm:$0xff]  }
  0x37   :  { %964 = vmatprep.subr.bf16.mxu1 %v1062_v15  ;;  %v1081_v33 = vld [vmem:[#allocation3 + $0x4] ss:$28 sps:$4 sm:$0xff]   ;;  %v1088_v40 = vld [vmem:[#allocation5 + $0x170] sm:$0xff]   ;;  %v1092_v44 = vld [vmem:[#allocation5 + $0x160] sm:$0xff]  }
  0x38   :  { %943 = vmatpush3.bf16.msra.mxu0 %v1061_v14  ;;  %554 = vmatprep.mubr.bf16.mxu0 %v1081_v33  ;;  %v1089_v41 = vld [vmem:[#allocation5 + $0x130] sm:$0xff]   ;;  %v1090_v42 = vld [vmem:[#allocation5 + $0x168] sm:$0xff]   ;;  %v1093_v45 = vld [vmem:[#allocation5 + $0x120] sm:$0xff]  }
  0x39   :  { %944 = vmatprep.subr.bf16.mxu0 %v1064_v17  ;;  %v1091_v43 = vld [vmem:[#allocation5 + $0x128] sm:$0xff]   ;;  %v1095_v47 = vld [vmem:[#allocation5 + $0x118] sm:$0xff]   ;;  %v1096_v48 = vld [vmem:[#allocation5 + $0x150] sm:$0xff]  }
  0x3a   :  { %965 = vmatpush3.bf16.msra.mxu1 %v1063_v16  ;;  %v1102_v49 = vld [vmem:[#allocation5 + $0x180] sm:$0xff]   ;;  %v1097_v50 = vld [vmem:[#allocation5 + $0x110] sm:$0xff]   ;;  %v1105_v51 = vld [vmem:[#allocation3 + $0x14] ss:$28 sps:$4 sm:$0xff]  }
  0x3b   :  { %966 = vmatprep.subr.bf16.mxu1 %v1066_v19  ;;  %v1098_v52 = vld [vmem:[#allocation5 + $0x148] sm:$0xff]   ;;  %v1106_v53 = vld [vmem:[#allocation3 + $0x18] ss:$28 sps:$4 sm:$0xff]   ;;  %v1103_v57 = vld [vmem:[#allocation3 + $0x10] ss:$28 sps:$4 sm:$0xff]  }
  0x3c   :  { %945 = vmatpush3.bf16.msra.mxu0 %v1065_v18  ;;  %v1099_v54 = vld [vmem:[#allocation5 + $0x108] sm:$0xff]   ;;  %v1100_v55 = vld [vmem:[#allocation5 + $0x140] sm:$0xff]   ;;  %v1108_v59 = vld [vmem:[#allocation7 + $0x30] sm:$0xff]  }
  0x3d   :  { %946 = vmatprep.subr.bf16.mxu0 %v1068_v21  ;;  %v1101_v56 = vld [vmem:[#allocation5 + $0x100] sm:$0xff]   ;;  %v1109_v60 = vld [vmem:[#allocation7 + $0x28] sm:$0xff]   ;;  %v1110_v61 = vld [vmem:[#allocation7 + $0x20] sm:$0xff]  }
  0x3e   :  { %967 = vmatpush3.bf16.msra.mxu1 %v1067_v20  ;;  %v1107_v58 = vld [vmem:[#allocation7 + $0x38] sm:$0xff]   ;;  %v1112_v63 = vld [vmem:[#allocation7 + $0x10] sm:$0xff]   ;;  %v1113_v0 = vld [vmem:[#allocation7 + $0x8] sm:$0xff]  }
  0x3f   :  { %968 = vmatprep.subr.bf16.mxu1 %v1070_v23  ;;  %v1111_v62 = vld [vmem:[#allocation7 + $0x18] sm:$0xff]   ;;  %v1114_v1 = vld [vmem:[#allocation7] sm:$0xff]  }
  0x40   :  { %947 = vmatpush3.bf16.msra.mxu0 %v1069_v22  ;;  %v864_v14 = vld [vmem:[%s1289_s2] ss:$0 sm:$0xff] }
  0x41   :  { %948 = vmatprep.subr.bf16.mxu0 %v1072_v25 }
  0x42   :  { %969 = vmatpush3.bf16.msra.mxu1 %v1071_v24 }
  0x43   :  { %970 = vmatprep.subr.bf16.mxu1 %v1074_v27 }
  0x44   :  { %949 = vmatpush3.bf16.msra.mxu0 %v1073_v26 }
  0x45   :  { %950 = vmatprep.subr.bf16.mxu0 %v1076_v29 }
  0x46   :  { %971 = vmatpush3.bf16.msra.mxu1 %v1075_v28 }
  0x47   :  { %972 = vmatprep.subr.bf16.mxu1 %v1078_v31 }
  0x48   :  { %951 = vmatpush3.bf16.msra.mxu0 %v1077_v30 }
  0x49   :  { %980 = vmatprep.subr.bf16.mxu0 %v1083_v35 }
  0x4a   :  { %973 = vmatpush3.bf16.msra.mxu1 %v1082_v34 }
  0x4b   :  { %555 = vmatmul.mubr.bf16.vlgmr.msra.gmra.mxu0 %v1079_v32  ;;  %1013 = vmatprep.subr.bf16.mxu1 %v1192_v39 }
  0x4c   :  { %981 = vmatpush3.bf16.msra.mxu0 %v1087_v38  ;;  %636 = vmatprep.mubr.bf16.mxu0 %v1105_v51 }
  0x4d   :  { %596 = vmatmul.mubr.bf16.vlgmr.msra.gmra.mxu1 %v1084_v36  ;;  %982 = vmatprep.subr.bf16.mxu0 %v1088_v40  ;;  %v922_v36 = vld [vmem:[%s1291_s4] ss:$0 sm:$0xff] }
  0x4e   :  { %1015 = vmatprep.mubr.msk.bf16.mxu1 %vm1193_vm0, %v1192_v39  ;;  %1014 = vmatpush3.bf16.msra.mxu1 %v1102_v49 }
  0x4f   :  { %1019 = vmatprep.subr.bf16.mxu1 %v1192_v39 }
  0x50   :  { %983 = vmatpush3.bf16.msra.mxu0 %v1089_v41 }
  0x51   :  { %984 = vmatprep.subr.bf16.mxu0 %v1090_v42 }
  0x54   :  { %985 = vmatpush3.bf16.msra.mxu0 %v1091_v43 }
  0x55   :  { %986 = vmatprep.subr.bf16.mxu0 %v1092_v44  ;;  %1016 = vmatmul.mubr.msk.bf16.vlgmr.msra.gmra.mxu1 %vm518_vm1, %v1106_v53 }
  0x56   :  { %1035 = vmatprep.mubr.msk.bf16.mxu1 %vm1193_vm0, %v1192_v39  ;;  %1020 = vmatpush3.bf16.msra.mxu1 %v1107_v58  ;;  %v933_v58 = vld [vmem:[%s1294_s7] ss:$0 sm:$0xff] }
  0x57   :  { %1021 = vmatprep.subr.bf16.mxu1 %v1192_v39 }
  0x58   :  { %987 = vmatpush3.bf16.msra.mxu0 %v1093_v45 }
  0x59   :  { %988 = vmatprep.subr.bf16.mxu0 %v1094_v46 }
  0x5a   :  { %1022 = vmatpush3.bf16.msra.mxu1 %v1108_v59 }
  0x5b   :  { %1023 = vmatprep.subr.bf16.mxu1 %v1192_v39 }
  0x5c   :  { %989 = vmatpush3.bf16.msra.mxu0 %v1095_v47 }
  0x5d   :  { %990 = vmatprep.subr.bf16.mxu0 %v1096_v48 }
  0x5e   :  { %1024 = vmatpush3.bf16.msra.mxu1 %v1109_v60 }
  0x5f   :  { %1025 = vmatprep.subr.bf16.mxu1 %v1192_v39 }
  0x60   :  { %991 = vmatpush3.bf16.msra.mxu0 %v1097_v50 }
  0x61   :  { %992 = vmatprep.subr.bf16.mxu0 %v1098_v52  ;;  %v931_v52 = vld [vmem:[%s1292_s5] ss:$0 sm:$0xff] }
  0x62   :  { %1026 = vmatpush3.bf16.msra.mxu1 %v1110_v61  ;;  %v934_v61 = vld [vmem:[#allocation2] ss:$0 sm:$0xff] }
  0x63   :  { %1027 = vmatprep.subr.bf16.mxu1 %v1192_v39 }
  0x64   :  { %993 = vmatpush3.bf16.msra.mxu0 %v1099_v54 }
  0x65   :  { %994 = vmatprep.subr.bf16.mxu0 %v1100_v55  ;;  %v932_v55 = vld [vmem:[%s1293_s6] ss:$0 sm:$0xff] }
  0x66   :  { %1028 = vmatpush3.bf16.msra.mxu1 %v1111_v62 }
  0x67   :  { %1029 = vmatprep.subr.bf16.mxu1 %v1192_v39 }
  0x68   :  { %995 = vmatpush3.bf16.msra.mxu0 %v1101_v56 }
  0x6a   :  { %1030 = vmatpush3.bf16.msra.mxu1 %v1112_v63 }
  0x6b   :  { %637 = vmatmul.mubr.bf16.vlgmr.msra.gmra.mxu0 %v1103_v57  ;;  %1031 = vmatprep.subr.bf16.mxu1 %v1192_v39 }
  0x6e   :  { %1032 = vmatpush3.bf16.msra.mxu1 %v1113_v0 }
  0x6f   :  { %1033 = vmatprep.subr.bf16.mxu1 %v1192_v39 }
  0x72   :  { %1034 = vmatpush3.bf16.msra.mxu1 %v1114_v1 }
 0x10b   :  { %v952_v5 = vpop.f32.mrf.mxu0 }
 0x10d   :  { %v974_v2 = vpop.f32.mrf.mxu1  ;;  %v953_v8 = vpop.f32.mrf.mxu0 }
 0x10e   :  { %v954_v13 = vadd.f32 %v953_v8, %v952_v5 }
 0x10f   :  { %v975_v3 = vpop.f32.mrf.mxu1  ;;  %v955_v11 = vpop.f32.mrf.mxu0 }
 0x110   :  { %v557_v16 = vadd.f32 %v954_v13, %v864_v14  ;;  %v976_v17 = vadd.f32 %v975_v3, %v974_v2 }
 0x111   :  { %v977_v4 = vpop.f32.mrf.mxu1  ;;  %v956_v15 = vpop.f32.mrf.mxu0 }
 0x112   :  { %v957_v18 = vadd.f32 %v956_v15, %v955_v11  ;;  %v598_v21 = vadd.f32 %v976_v17, %v557_v16 }
 0x113   :  { %v978_v6 = vpop.f32.mrf.mxu1 }
 0x114   :  { %v560_v22 = vadd.f32 %v957_v18, %v864_v14  ;;  %v979_v23 = vadd.f32 %v978_v6, %v977_v4 }
 0x115   :  { %v679_v7 = vpop.f32.mrf.mxu1 }
 0x116   :  { %v601_v28 = vadd.f32 %v979_v23, %v560_v22 }
 0x117   :  { %v1017_v9 = vpop.f32.mrf.mxu1 }
 0x119   :  { %v682_v10 = vpop.f32.mrf.mxu1 }
 0x11b   :  { %v1018_v12 = vpop.f32.mrf.mxu1 }
 0x12b   :  { %v996_v19 = vpop.f32.mrf.mxu0 }
 0x12d   :  { %v997_v20 = vpop.f32.mrf.mxu0 }
 0x12e   :  { %v998_v24 = vadd.f32 %v997_v20, %v996_v19 }
 0x12f   :  { %v999_v25 = vpop.f32.mrf.mxu0 }
 0x130   :  { %v639_v26 = vadd.f32 %v998_v24, %v598_v21 }
 0x131   :  { %v1000_v27 = vpop.f32.mrf.mxu0 }
 0x132   :  { %v1001_v29 = vadd.f32 %v1000_v27, %v999_v25  ;;  %v680_v30 = vadd.f32 %v679_v7, %v639_v26 }
 0x134   :  { %v642_v31 = vadd.f32 %v1001_v29, %v601_v28  ;;  %v686_v33 = vmax.f32 %v680_v30, 0.0 }
 0x136   :  { %v683_v32 = vadd.f32 %v682_v10, %v642_v31 }
 0x138   :  { %v687_v34 = vmax.f32 %v683_v32, 0.0 }
 0x13a   :  { %v688_v35 = vpack.c.bf16 %v687_v34, %v686_v33 }
 0x13c   :  { %1036 = vmatmul.mubr.bf16.vlgmr.msra.gmra.mxu1 %v688_v35 }
 0x1fc   :  { %v794_v37 = vpop.f32.mrf.mxu1 }
 0x1fd   :  { %v795_v39 = vadd.f32 %v922_v36, %v794_v37 }
 0x1fe   :  { %v1037_v38 = vpop.f32.mrf.mxu1 }
 0x1ff   :  { %v801_v43 = vmax.f32 %v795_v39, 0.0 }
 0x200   :  { %v797_v40 = vpop.f32.mrf.mxu1 }
 0x201   :  { %v798_v41 = vadd.f32 %v922_v36, %v797_v40 }
 0x202   :  { %v1038_v42 = vpop.f32.mrf.mxu1 }
 0x203   :  { %v802_v44 = vmax.f32 %v798_v41, 0.0 }
 0x205   :  { %v803_v45 = vsub.f32 %v801_v43, %v802_v44 }
 0x207   :  { %v804_v46 = vmul.f32 %v803_v45, %v803_v45 }
 0x209   :  { %805 = vadd.xlane.f32.xlu0 %v804_v46 }
 0x292   :  { %v806_v47 = vpop.xlane.xlu0 %805 }
 0x293   :  { %v807_v48 = vmax.f32 %v806_v47, 0.001 }
 0x295   :  { %1115 = vrsqrt.f32 %v807_v48  ;;  %vm810_vm2 = vcmp.eq.f32.partialorder %v807_v48, inf  ;;  %v813_v51 = vand.u32 2147483648, %v807_v48  ;;  %vm812_vm3 = vcmp.eq.f32.partialorder %v807_v48, 0.0 }
 0x2a2   :  { %v1116_v49 = vpop.eup %1115 }
 0x2a3   :  { %v809_v50 = vmul.f32 %v1116_v49, %v807_v48 }
 0x2a5   :  { %v811_v53 = vsel %vm810_vm2, %v807_v48, %v809_v50 }
 0x2a6   :  { %v814_v54 = vsel %vm812_vm3, %v813_v51, %v811_v53 }
 0x2a7   :  { %v822_v56 = vmul.f32 %v931_v52, %v814_v54 }
 0x2a9   :  { %v830_v57 = vadd.f32 %v932_v55, %v822_v56 }
 0x2ab   :  { %v831_v59 = vmax.f32 %v830_v57, 0.0 }
 0x2ad   :  { %v839_v60 = vmul.f32 %v933_v58, %v831_v59 }
 0x2af   :  { %840 = vadd.xlane.f32.xlu0 %v839_v60 }
 0x338   :  { %v841_v62 = vpop.xlane.xlu0 %840 }
 0x339   :  { %v849_v63 = vadd.f32 %v934_v61, %v841_v62 }
 0x33b   :  { %v935_v0 = vmul.f32 -1.442695, %v849_v63 }
 0x33d   :  { %1117 = vpow2.f32 %v935_v0 }
 0x34a   :  { %v1118_v1 = vpop.eup %1117 }
 0x34b   :  { %v853_v2 = vadd.f32 1.0, %v1118_v1 }
 0x34d   :  { %1119 = vrcp.f32 %v853_v2 }
 0x35a   :  { %v1120_v3 = vpop.eup %1119 }
 0x35b   :  { %857 = vst.msk [vmem:[%s1296_s9] sm:$0xff] %vm856_vm4, %v1120_v3 }
 0x35c   :  { %862 = vsyncpa [#allocation4], 1 }
 0x35d   :  { %863 = vsyncpa [#allocation6], 1 }

</bundles_post_ra>
